<compile_context>
chip_gen: v7x
topology: tpu7x:2x2x1
jax: 0.10.0
libtpu: 0.0.40
codegen_flags: <defaults>
</compile_context>

<pallas_src>
import math

import jax
import jax.numpy as jnp
from jax.experimental import pallas as pl
from jax.experimental.pallas import tpu as pltpu

_LANE = 128
_SUBLANE = 8
_NEG_BIG = -1e30  # effectively -inf for padded label columns


def _round_up(x, m):
    return ((x + m - 1) // m) * m


def _linear_softmax_kernel(x_ref, w_ref, b_ref, o_ref):
    # x_ref: (TM, H) bf16, w_ref: (H, Lp) bf16, b_ref: (1, Lp) f32, o_ref: (TM, Lp) f32
    logits = jnp.dot(x_ref[...], w_ref[...], preferred_element_type=jnp.float32)
    logits = logits + b_ref[...]          # padded columns -> ~ -1e30
    # Dropout(p=0.2): identity in eval/inference mode.
    # Numerically-stable softmax over the (lane-dense) label axis, all in f32.
    m = jnp.max(logits, axis=-1, keepdims=True)
    e = jnp.exp(logits - m)               # padded columns underflow to exactly 0
    denom = jnp.sum(e, axis=-1, keepdims=True)
    o_ref[...] = (e * pl.reciprocal(denom, approx=True)).astype(o_ref.dtype)


def _pick_tile_rows(n, h, lp, max_tile=1024, budget_bytes=20 << 20):
    """Largest row tile whose double-buffered x/out tiles + resident W fit the budget."""
    n8 = _round_up(max(n, 1), _SUBLANE)
    resident = h * lp * 2 + _SUBLANE * lp * 4          # bf16 weight + (padded) f32 bias
    tm = _round_up(min(max_tile, n8), _SUBLANE)
    while tm > _SUBLANE:
        tiles = 2 * (tm * h * 2 + tm * lp * 4)         # 2x (bf16 x tile + f32 out tile)
        if resident + tiles <= budget_bytes:
            break
        tm = _round_up(tm // 2, _SUBLANE)
    return max(_SUBLANE, tm)


def linear_softmax(x, weight_t_bf16, bias_padded, label_size):
    """x: (N, H); weight_t_bf16: (H, Lp) bf16; bias_padded: (1, Lp) f32 -> (N, label_size) f32."""
    n, h = x.shape
    h2, lp = weight_t_bf16.shape
    assert h == h2, "hidden_dim mismatch"
    assert lp % _LANE == 0

    tm = _pick_tile_rows(n, h, lp)
    n_pad = _round_up(n, tm)

    x_bf16 = x.astype(jnp.bfloat16)
    if n_pad != n:
        x_bf16 = jnp.pad(x_bf16, ((0, n_pad - n), (0, 0)))

    grid = (n_pad // tm,)

    vmem_needed = (h * lp * 2 + _SUBLANE * lp * 4
                   + 2 * (tm * h * 2 + tm * lp * 4)
                   + (4 << 20))                         # headroom
    vmem_limit = int(min(max(vmem_needed, 32 << 20), 64 << 20))
    # TODO(synk): if H*Lp weight ever exceeds the VMEM budget, add a K-reduction
    # grid axis ("arbitrary", last) with a (TM, Lp) f32 scratch accumulator.

    out = pl.pallas_call(
        _linear_softmax_kernel,
        out_shape=jax.ShapeDtypeStruct((n_pad, lp), jnp.float32),
        grid_spec=pltpu.PrefetchScalarGridSpec(
            num_scalar_prefetch=0,
            grid=grid,
            in_specs=[
                pl.BlockSpec((tm, h), lambda i: (i, 0)),    # x: streamed over rows
                pl.BlockSpec((h, lp), lambda i: (0, 0)),    # W^T: resident
                pl.BlockSpec((1, lp), lambda i: (0, 0)),    # bias: resident
            ],
            out_specs=pl.BlockSpec((tm, lp), lambda i: (i, 0)),
        ),
        compiler_params=pltpu.CompilerParams(
            dimension_semantics=("parallel",),
            vmem_limit_bytes=vmem_limit,
        ),
        cost_estimate=pl.CostEstimate(
            flops=2 * n_pad * h * lp,
            transcendentals=n_pad * lp,
            bytes_accessed=(n_pad * h * 2) + (h * lp * 2) + (lp * 4) + (n_pad * lp * 4),
        ),
    )(x_bf16, weight_t_bf16, bias_padded)

    return out[:n, :label_size]


class LinearModule:
    """JAX counterpart of the PyTorch Linear module (inference semantics)."""

    def __init__(self, hidden_dim, label_size, key):
        self.hidden_dim = hidden_dim
        self.label_size = label_size
        self.padded_label = _round_up(label_size, _LANE)

        kw, kb = jax.random.split(key)
        # Deterministic init mimicking nn.Linear default: U(-1/sqrt(H), 1/sqrt(H))
        bound = 1.0 / math.sqrt(hidden_dim)
        self.weight = jax.random.uniform(
            kw, (label_size, hidden_dim), jnp.float32, -bound, bound
        )
        self.bias = jax.random.uniform(kb, (label_size,), jnp.float32, -bound, bound)

        # Kernel-friendly layout, computed once:
        #   W^T padded to (H, Lp), bf16 for the MXU; pad columns are zero weights.
        wt = jnp.zeros((hidden_dim, self.padded_label), jnp.float32)
        wt = wt.at[:, :label_size].set(self.weight.T)
        self.weight_t_bf16 = wt.astype(jnp.bfloat16)
        #   Bias padded to (1, Lp), f32; pad columns get a huge negative bias so the
        #   softmax gives them zero probability mass.
        b = jnp.full((1, self.padded_label), _NEG_BIG, jnp.float32)
        self.bias_padded = b.at[0, :label_size].set(self.bias)

    def __call__(self, x):
        # Equivalent of x.view(-1, f_len).to(float32)
        f_len = x.shape[-1]
        x = jnp.asarray(x, dtype=jnp.float32).reshape(-1, f_len)
        return linear_softmax(
            x, self.weight_t_bf16, self.bias_padded, self.label_size
        )


if __name__ == "__main__":
    key = jax.random.PRNGKey(0)
    k_param, k_x = jax.random.split(key)

    batch, hidden_dim, label_size = 8, 32, 16
    model = LinearModule(hidden_dim, label_size, k_param)

    x = jax.random.normal(k_x, (batch, hidden_dim), dtype=jnp.float32)

    y = model(x)
    y = jax.block_until_ready(y)

    # Reference check in plain JAX (same math, dropout identity at inference).
    logits_ref = x @ model.weight.T + model.bias
    y_ref = jax.nn.softmax(logits_ref, axis=-1)

    assert y.shape == (batch, label_size)
    # bf16 matmul inputs + approx reciprocal -> slightly looser tolerance than f32.
    assert jnp.allclose(y, y_ref, atol=2e-2, rtol=2e-2)
    assert jnp.allclose(jnp.sum(y, axis=-1), 1.0, atol=1e-2)

    print("KERNEL_OK")
</pallas_src>

<mosaic_0001>
module attributes {stable_mosaic.version = 11 : i64} {
  func.func @_linear_softmax_kernel(%arg0: i32, %arg1: memref<8x32xbf16, #tpu.memory_space<vmem>>, %arg2: memref<32x128xbf16, #tpu.memory_space<vmem>>, %arg3: memref<1x128xf32, #tpu.memory_space<vmem>>, %arg4: memref<8x128xf32, #tpu.memory_space<vmem>>) attributes {dimension_semantics = [#tpu.dimension_semantics<parallel>], iteration_bounds = array<i64: 1>, scalar_prefetch = 0 : i64, scratch_operands = 0 : i64, tpu.core_type = #tpu.core_type<tc>, window_params = [{transform_indices = @transform_0, window_bounds = array<i64: 8, 32>}, {pipeline_mode = #tpu.pipeline_mode<synchronous>, transform_indices = @transform_1, window_bounds = array<i64: 32, 128>}, {pipeline_mode = #tpu.pipeline_mode<synchronous>, transform_indices = @transform_2, window_bounds = array<i64: 1, 128>}, {transform_indices = @transform_3, window_bounds = array<i64: 8, 128>}]} {
    %c0 = arith.constant 0 : index
    %c0_0 = arith.constant 0 : index
    %0 = vector.load %arg1[%c0, %c0_0] : memref<8x32xbf16, #tpu.memory_space<vmem>>, vector<8x32xbf16>
    %c0_1 = arith.constant 0 : index
    %c0_2 = arith.constant 0 : index
    %1 = vector.load %arg2[%c0_1, %c0_2] : memref<32x128xbf16, #tpu.memory_space<vmem>>, vector<32x128xbf16>
    %cst = arith.constant dense<0.000000e+00> : vector<8x128xf32>
    %2 = tpu.matmul %0, %1, %cst {dimension_numbers = #tpu.dot_dimension_numbers<[1], [0], [0], [1], [0, 0, 1, 1], [], []>} : vector<8x32xbf16>, vector<32x128xbf16>, vector<8x128xf32> -> vector<8x128xf32>
    %c0_3 = arith.constant 0 : index
    %c0_4 = arith.constant 0 : index
    %3 = vector.load %arg3[%c0_3, %c0_4] : memref<1x128xf32, #tpu.memory_space<vmem>>, vector<1x128xf32>
    %4 = vector.broadcast %3 : vector<1x128xf32> to vector<8x128xf32>
    %5 = arith.addf %2, %4 : vector<8x128xf32>
    %cst_5 = arith.constant dense<0xFF800000> : vector<8xf32>
    %6 = vector.multi_reduction <maximumf>, %5, %cst_5 [1] : vector<8x128xf32> to vector<8xf32>
    %7 = vector.shape_cast %6 : vector<8xf32> to vector<8x1xf32>
    %8 = vector.broadcast %7 : vector<8x1xf32> to vector<8x128xf32>
    %9 = arith.subf %5, %8 : vector<8x128xf32>
    %10 = math.exp %9 : vector<8x128xf32>
    %cst_6 = arith.constant dense<0.000000e+00> : vector<8xf32>
    %11 = vector.multi_reduction <add>, %10, %cst_6 [1] : vector<8x128xf32> to vector<8xf32>
    %12 = vector.shape_cast %11 : vector<8xf32> to vector<8x1xf32>
    %13 = tpu.reciprocal %12 {approx = true} : vector<8x1xf32> -> vector<8x1xf32>
    %14 = vector.broadcast %13 : vector<8x1xf32> to vector<8x128xf32>
    %15 = arith.mulf %10, %14 : vector<8x128xf32>
    %c0_7 = arith.constant 0 : index
    %c0_8 = arith.constant 0 : index
    %16 = vector.load %arg4[%c0_7, %c0_8] : memref<8x128xf32, #tpu.memory_space<vmem>>, vector<8x128xf32>
    tpu.vector_store %arg4[%c0_7, %c0_8], %15 {strides = array<i32>} : memref<8x128xf32, #tpu.memory_space<vmem>>, vector<8x128xf32>,
    return
  }
  func.func @transform_0(%arg0: i32) -> (i32, i32) {
    %c0_i32 = arith.constant 0 : i32
    %c0_i32_0 = arith.constant 0 : i32
    return %arg0, %c0_i32 : i32, i32
  }
  func.func @transform_1(%arg0: i32) -> (i32, i32) {
    %c0_i32 = arith.constant 0 : i32
    %c0_i32_0 = arith.constant 0 : i32
    %c0_i32_1 = arith.constant 0 : i32
    return %c0_i32, %c0_i32_0 : i32, i32
  }
  func.func @transform_2(%arg0: i32) -> (i32, i32) {
    %c0_i32 = arith.constant 0 : i32
    %c0_i32_0 = arith.constant 0 : i32
    %c0_i32_1 = arith.constant 0 : i32
    return %c0_i32, %c0_i32_0 : i32, i32
  }
  func.func @transform_3(%arg0: i32) -> (i32, i32) {
    %c0_i32 = arith.constant 0 : i32
    %c0_i32_0 = arith.constant 0 : i32
    return %arg0, %c0_i32 : i32, i32
  }
}

</mosaic_0001>

<bundles_post_ra>
// kernel: tpu_custom_call.1
= control target key start
LH: loop header
LB: loop body
LE: loop exit
PB: predicated region body
PF: predicated region fallthrough
CT: control target
= control target key end

     0   :  { %8 = vsyncpa [#allocation3], 0  ;;  %s309_s0 = inlined_call_operand.hbm [shape: bf16[8,32], index: 0, kind: input, shape index: {}]   ;;  %s310_s1 = inlined_call_operand.hbm [shape: bf16[32,128], index: 1, kind: input, shape index: {}]   ;;  %s311_s2 = inlined_call_operand.vmem [shape: f32[1,128], index: 2, kind: input, shape index: {}]   ;;  %s312_s3 = inlined_call_operand.hbm [shape: f32[8,128], index: 3, kind: output, shape index: {}]  }
   0x1   :  { %9 = vsyncpa [#allocation6], 0 }
   0x2   :  { %10 = vsyncpa [#allocation4], 0  ;;  %s236_s12 = smov [#allocation2]   ;;  %s237_s14 = smov [#allocation5]  }
   0x3   :  { %s17_s13 = sshll.u32 %s236_s12, 4  ;;  %s26_s15 = sshll.u32 %s237_s14, 4  ;;  %s18_s13 = int_to_ptr.vmem [resolvable:$true] %s17_s13  ;;  %s263_s15 = int_to_ptr.vmem [resolvable:$true] %s26_s15 }
   0x4   :  { %s164_s18 = scalar_lea.hbm %s309_s0, 64 }
   0x5   :  { %p165_p0 = scmp.ne.s32.totalorder %s309_s0, %s164_s18  ;;  %p168_p1 = scmp.lt.u32.totalorder %s164_s18, %s309_s0 }
   0x7   :  { %p170_p2 = pnand %p168_p1, %p165_p0 }
   0x9   :  { %173 = shalt.err (!%p170_p2)
}
   0xa   :  { %s174_s23 = scalar_lea.vmem %s18_s13, 64  ;;  %p179_p4 = scmp.lt.s32.totalorder %s18_s13, %s18_s13 }
   0xb   :  { %p175_p3 = scmp.ne.s32.totalorder %s18_s13, %s174_s23  ;;  %p180_p5 = scmp.lt.s32.totalorder %s174_s23, %s174_s23 }
   0xd   :  { %p181_p6 = por %p180_p5, %p179_p4 }
   0xf   :  { %p182_p7 = pnand %p181_p6, %p175_p3 }
  0x11   :  { %185 = shalt.err (!%p182_p7)
}
  0x12   :  { %20 = dma.hbm_to_vmem [thread:$0]  %s309_s0, 64, %s18_s13, [#allocation3]  }
  0x13   :  { %s186_s28 = scalar_lea.hbm %s310_s1, 256 }
  0x14   :  { %p187_p8 = scmp.ne.s32.totalorder %s310_s1, %s186_s28  ;;  %p190_p9 = scmp.lt.u32.totalorder %s186_s28, %s310_s1 }
  0x16   :  { %p192_p10 = pnand %p190_p9, %p187_p8 }
  0x18   :  { %195 = shalt.err (!%p192_p10)
}
  0x19   :  { %s196_s6 = scalar_lea.vmem %s263_s15, 256  ;;  %p201_p12 = scmp.lt.s32.totalorder %s263_s15, %s263_s15 }
  0x1a   :  { %p197_p11 = scmp.ne.s32.totalorder %s263_s15, %s196_s6  ;;  %p202_p13 = scmp.lt.s32.totalorder %s196_s6, %s196_s6 }
  0x1c   :  { %p203_p0 = por %p202_p13, %p201_p12 }
  0x1e   :  { %p204_p1 = pnand %p203_p0, %p197_p11 }
  0x20   :  { %207 = shalt.err (!%p204_p1)
}
  0x21   :  { %s238_s0 = smov 64   ;;  %s239_s7 = smov 4  }
  0x22   :  { %32 = dma.hbm_to_vmem [thread:$0]  %s310_s1, 256, %s263_s15, [#allocation6], %s238_s0, %s238_s0, %s239_s7  }
  0x23   :  { %230 = dma.done.wait [#allocation3], 64  }
  0x24   :  { %231 = vsyncadd [#allocation3], 4294967232 }
  0x25   :  { %232 = dma.done.wait [#allocation6], 256  }
  0x26   :  { %233 = vsyncadd [#allocation6], 4294967040  ;;  %v240_v0 = vmov 0.0   ;;  %vm241_vm0 = vmmov 0   ;;  %v158_v1 = vld [vmem:[#allocation5] sm:$0xff]   ;;  %v159_v2 = vld [vmem:[#allocation5 + $0x8] sm:$0xff]  }
  0x27   :  { %143 = vmatprep.subr.bf16.mxu0 %v240_v0  ;;  %147 = vmatprep.mubr.msk.bf16.mxu0 %vm241_vm0, %v240_v0  ;;  %v42_v3 = vld [vmem:[#allocation2] sm:$0xf]  ;;  %vm66_vm1 = vcmask 261120   ;;  %s242_s1 = smov [#allocation7]  }
  0x28   :  { %144 = vmatpush3.bf16.msra.mxu0 %v158_v1  ;;  %v136_v4 = vld [vmem:[%s311_s2] ss:$0 sm:$0xff]  ;;  %s126_s12 = sshll.u32 %s242_s1, 4  ;;  %s127_s12 = int_to_ptr.vmem [resolvable:$true] %s126_s12 }
  0x29   :  { %145 = vmatprep.subr.bf16.mxu0 %v240_v0  ;;  %s208_s2 = scalar_lea.vmem %s127_s12, 128  ;;  %p213_p3 = scmp.lt.s32.totalorder %s127_s12, %s127_s12 }
  0x2a   :  { %p209_p2 = scmp.ne.s32.totalorder %s127_s12, %s208_s2  ;;  %p214_p4 = scmp.lt.s32.totalorder %s208_s2, %s208_s2 }
  0x2c   :  { %146 = vmatpush3.bf16.msra.mxu0 %v159_v2  ;;  %p215_p5 = por %p214_p4, %p213_p3 }
  0x2e   :  { %p216_p6 = pnand %p215_p5, %p209_p2 }
  0x2f   :  { %148 = vmatmul.mubr.msk.bf16.vlgmr.msra.gmra.mrb[0].mxu0 %vm66_vm1, %v42_v3 }
 0x102   :  { %v104_v5 = vpop.f32.mrb[0].mxu0 }
 0x103   :  { %v105_v6 = vadd.f32 %v136_v4, %v104_v5  ;;  %v149_v7 = vpop.f32.mrb[1].mxu0 }
 0x104   :  { %v107_v8 = vpop.f32.mrb[2].mxu0 }
 0x105   :  { %110 = vmax.xlane.f32.xlu0 %v105_v6  ;;  %v150_v9 = vpop.f32.mrb[3].mxu0 }
 0x192   :  { %v111_v10 = vpop.xlane.xlu0 %110 }
 0x193   :  { %v112_v11 = vsub.f32 %v105_v6, %v111_v10 }
 0x195   :  { %v113_v12 = vmul.f32 1.442695, %v112_v11 }
 0x197   :  { %160 = vpow2.f32 %v113_v12 }
 0x1a1   :  { %v161_v13 = vpop.eup %160 }
 0x1a2   :  { %115 = vadd.xlane.f32.xlu0 %v161_v13 }
 0x22f   :  { %v116_v14 = vpop.xlane.xlu0 %115 }
 0x230   :  { %162 = vrcp.f32 %v116_v14 }
 0x23a   :  { %v163_v15 = vpop.eup %162 }
 0x23b   :  { %v118_v16 = vmul.f32 %v163_v15, %v161_v13 }
 0x23d   :  { %119 = vst [vmem:[#allocation7] sm:$0xff] %v118_v16 }
 0x23e   :  { %219 = shalt.err (!%p216_p6)
}
 0x23f   :  { %s220_s15 = scalar_lea.hbm %s312_s3, 128 }
 0x240   :  { %p221_p7 = scmp.ne.s32.totalorder %s312_s3, %s220_s15  ;;  %p224_p8 = scmp.lt.u32.totalorder %s220_s15, %s312_s3 }
 0x242   :  { %p226_p9 = pnand %p224_p8, %p221_p7 }
 0x244   :  { %229 = shalt.err (!%p226_p9)
}
 0x245   :  { %129 = dma.vmem_to_hbm [thread:$0]  %s127_s12, 128, %s312_s3, [#allocation4]  }
 0x246   :  { %234 = dma.done.wait [#allocation4], 128  }
 0x247   :  { %235 = vsyncadd [#allocation4], 4294967168 }
 0x248   :  { %133 = vsyncpa [#allocation3], 1 }
 0x249   :  { %134 = vsyncpa [#allocation6], 1 }
 0x24a   :  { %135 = vsyncpa [#allocation4], 1 }

</bundles_post_ra>
